<compile_context>
chip_gen: v7x
topology: tpu7x:2x2x1
jax: 0.10.0
libtpu: 0.0.40
codegen_flags: <defaults>
</compile_context>

<pallas_src>
import functools

import jax
import jax.numpy as jnp
from jax.experimental import pallas as pl
from jax.experimental.pallas import tpu as pltpu


def _round_up(x, m):
    return ((x + m - 1) // m) * m


def _mlp_kernel(n_layers, x_ref, *refs):
    """Fused MLP on one row-tile: n_layers x (bf16 matmul -> f32 bias -> ReLU).

    refs = (w1_ref, b1_ref, ..., wL_ref, bL_ref, out_ref)
      x_ref   : [TILE_N, in_p]   bf16 row-tile of (padded) node features
      w_refs  : [K_p, hid_p]     bf16, resident in VMEM across grid steps
      b_refs  : [1, hid_p]       f32
      out_ref : [TILE_N, hid_p]  f32
    """
    out_ref = refs[-1]
    param_refs = refs[:-1]

    h = x_ref[...]  # bf16; first-layer MXU LHS needs no cast
    # Python-unrolled layer loop: only h + one weight tile live at a time; biases are
    # broadcast once per layer (no re-broadcast inside any inner loop).
    for l in range(n_layers):
        w = param_refs[2 * l][...]        # bf16 [K_p, hid_p]
        b = param_refs[2 * l + 1][...]    # f32  [1, hid_p]
        # bf16 MXU operands, f32 accumulation; epilogue stays in f32 on the VPU.
        h = jnp.dot(h.astype(jnp.bfloat16), w, preferred_element_type=jnp.float32)
        h = jnp.maximum(h + b, 0.0)       # bias + ReLU
    out_ref[...] = h.astype(out_ref.dtype)


def mlp_net_forward(feature, weights, biases, *, tile_n=512):
    """Pallas wrapper for MLPNet.forward (the feat_mlp stack).

    feature : [N, in_dim] float32
    weights : list of [in, out] float32 (stored so the kernel computes h @ W + b)
    biases  : list of [1, out] float32
    returns : [N, hidden] float32
    """
    n_layers = len(weights)
    N, in_dim = feature.shape
    hidden = weights[-1].shape[1]

    # ---- lane-dense padding: last dims -> multiples of 128, rows -> multiple of tile ----
    in_p = _round_up(in_dim, 128)
    hid_p = _round_up(hidden, 128)
    tile_n = _round_up(min(tile_n, _round_up(N, 8)), 8)   # sublane-aligned, no over-tiling
    n_pad = _round_up(N, tile_n)

    # Pad + cast fused in one XLA op: bf16 row-tiles halve the feature DMA.
    x_p = (
        jnp.zeros((n_pad, in_p), jnp.float32)
        .at[:N, :in_dim]
        .set(feature)
        .astype(jnp.bfloat16)
    )

    args = [x_p]
    in_specs = [pl.BlockSpec((tile_n, in_p), lambda i: (i, 0))]

    pad_dims = [in_p] + [hid_p] * n_layers
    real_dims = [in_dim] + [hidden] * n_layers
    w_bytes = 0
    b_bytes = 0
    for l, (w, b) in enumerate(zip(weights, biases)):
        w_p = (
            jnp.zeros((pad_dims[l], pad_dims[l + 1]), jnp.float32)
            .at[: real_dims[l], : real_dims[l + 1]]
            .set(w)
            .astype(jnp.bfloat16)            # cast once outside the kernel: halves weight DMA
        )
        b_p = (
            jnp.zeros((1, pad_dims[l + 1]), jnp.float32)
            .at[:, : real_dims[l + 1]]
            .set(b)
        )
        args += [w_p, b_p]
        in_specs += [
            pl.BlockSpec(w_p.shape, lambda i: (0, 0)),   # weights: constant index_map -> resident
            pl.BlockSpec(b_p.shape, lambda i: (0, 0)),
        ]
        w_bytes += w_p.size * 2
        b_bytes += b_p.size * 4

    # ---- VMEM budget: double-buffered row tiles + resident params + activation temps ----
    vmem_bytes = 2 * tile_n * (in_p * 2 + hid_p * 4)     # in (bf16) / out (f32) tiles, 2 bufs
    vmem_bytes += 2 * (w_bytes + b_bytes)                # resident weights/biases (2 buffers)
    vmem_bytes += 4 * tile_n * hid_p * 4                 # in-kernel activation temporaries
    vmem_limit = min(max(int(1.5 * vmem_bytes), 16 * 1024 * 1024), 48 * 1024 * 1024)

    out_p = pl.pallas_call(
        functools.partial(_mlp_kernel, n_layers),
        out_shape=jax.ShapeDtypeStruct((n_pad, hid_p), jnp.float32),
        grid=(n_pad // tile_n,),
        in_specs=in_specs,
        out_specs=pl.BlockSpec((tile_n, hid_p), lambda i: (i, 0)),
        compiler_params=pltpu.CompilerParams(
            dimension_semantics=("parallel",),   # shard row-tiles across TCs on v7x
            vmem_limit_bytes=vmem_limit,
        ),
    )(*args)

    return out_p[:N, :hidden]


def init_params(key, in_dim, hidden_dim, n_layers):
    """Deterministic synthetic init matching nn.Linear shapes (stored as [in, out])."""
    weights, biases = [], []
    dims = [in_dim] + [hidden_dim] * n_layers
    for l in range(n_layers):
        key, kw, kb = jax.random.split(key, 3)
        fan_in = dims[l]
        bound = 1.0 / jnp.sqrt(fan_in)
        w = jax.random.uniform(kw, (dims[l], dims[l + 1]), jnp.float32, -bound, bound)
        b = jax.random.uniform(kb, (1, dims[l + 1]), jnp.float32, -bound, bound)
        weights.append(w)
        biases.append(b)
    return weights, biases


def reference_forward(feature, weights, biases):
    h = feature
    for w, b in zip(weights, biases):
        h = jnp.maximum(h @ w + b, 0.0)
    return h


if __name__ == "__main__":
    # net_params (small, deterministic): in_dim=16, hidden_dim=32, L=2, N=384 nodes.
    N, in_dim, hidden_dim, n_layers = 384, 16, 32, 2

    key = jax.random.PRNGKey(0)
    key, kf = jax.random.split(key)
    feature = jax.random.normal(kf, (N, in_dim), jnp.float32)
    # edge_index is unused by MLPNet.forward(); omitted.

    weights, biases = init_params(key, in_dim, hidden_dim, n_layers)

    # tile_n=128 here so the tiny test exercises a multi-step (grid=3) pipelined grid;
    # production default is tile_n=512.
    out = mlp_net_forward(feature, weights, biases, tile_n=128)
    out = jax.block_until_ready(out)

    ref = reference_forward(feature, weights, biases)
    assert out.shape == (N, hidden_dim)
    # bf16 MXU operands (f32 accumulation) -> loosened tolerance vs the pure-f32 reference.
    assert jnp.allclose(out, ref, atol=5e-2, rtol=5e-2), "mismatch vs reference"

    print("KERNEL_OK")
</pallas_src>

<mosaic_0001>
module attributes {stable_mosaic.version = 11 : i64} {
  func.func @_mlp_kernel(%arg0: i32, %arg1: memref<128x128xbf16, #tpu.memory_space<vmem>>, %arg2: memref<128x128xbf16, #tpu.memory_space<vmem>>, %arg3: memref<1x128xf32, #tpu.memory_space<vmem>>, %arg4: memref<128x128xbf16, #tpu.memory_space<vmem>>, %arg5: memref<1x128xf32, #tpu.memory_space<vmem>>, %arg6: memref<128x128xf32, #tpu.memory_space<vmem>>) attributes {dimension_semantics = [#tpu.dimension_semantics<parallel>], iteration_bounds = array<i64: 3>, scalar_prefetch = 0 : i64, scratch_operands = 0 : i64, tpu.core_type = #tpu.core_type<tc>, window_params = [{transform_indices = @transform_0, window_bounds = array<i64: 128, 128>}, {pipeline_mode = #tpu.pipeline_mode<synchronous>, transform_indices = @transform_1, window_bounds = array<i64: 128, 128>}, {pipeline_mode = #tpu.pipeline_mode<synchronous>, transform_indices = @transform_2, window_bounds = array<i64: 1, 128>}, {pipeline_mode = #tpu.pipeline_mode<synchronous>, transform_indices = @transform_3, window_bounds = array<i64: 128, 128>}, {pipeline_mode = #tpu.pipeline_mode<synchronous>, transform_indices = @transform_4, window_bounds = array<i64: 1, 128>}, {transform_indices = @transform_5, window_bounds = array<i64: 128, 128>}]} {
    %c0 = arith.constant 0 : index
    %c0_0 = arith.constant 0 : index
    %0 = vector.load %arg1[%c0, %c0_0] : memref<128x128xbf16, #tpu.memory_space<vmem>>, vector<128x128xbf16>
    %c0_1 = arith.constant 0 : index
    %c0_2 = arith.constant 0 : index
    %1 = vector.load %arg2[%c0_1, %c0_2] : memref<128x128xbf16, #tpu.memory_space<vmem>>, vector<128x128xbf16>
    %c0_3 = arith.constant 0 : index
    %c0_4 = arith.constant 0 : index
    %2 = vector.load %arg3[%c0_3, %c0_4] : memref<1x128xf32, #tpu.memory_space<vmem>>, vector<1x128xf32>
    %cst = arith.constant dense<0.000000e+00> : vector<128x128xf32>
    %3 = tpu.matmul %0, %1, %cst {dimension_numbers = #tpu.dot_dimension_numbers<[1], [0], [0], [1], [0, 0, 1, 1], [], []>} : vector<128x128xbf16>, vector<128x128xbf16>, vector<128x128xf32> -> vector<128x128xf32>
    %4 = vector.broadcast %2 : vector<1x128xf32> to vector<128x128xf32>
    %5 = arith.addf %3, %4 : vector<128x128xf32>
    %cst_5 = arith.constant 0.000000e+00 : f32
    %6 = vector.broadcast %cst_5 : f32 to vector<128x128xf32>
    %7 = arith.maximumf %5, %6 : vector<128x128xf32>
    %c0_6 = arith.constant 0 : index
    %c0_7 = arith.constant 0 : index
    %8 = vector.load %arg4[%c0_6, %c0_7] : memref<128x128xbf16, #tpu.memory_space<vmem>>, vector<128x128xbf16>
    %c0_8 = arith.constant 0 : index
    %c0_9 = arith.constant 0 : index
    %9 = vector.load %arg5[%c0_8, %c0_9] : memref<1x128xf32, #tpu.memory_space<vmem>>, vector<1x128xf32>
    %10 = arith.truncf %7 : vector<128x128xf32> to vector<128x128xbf16>
    %cst_10 = arith.constant dense<0.000000e+00> : vector<128x128xf32>
    %11 = tpu.matmul %10, %8, %cst_10 {dimension_numbers = #tpu.dot_dimension_numbers<[1], [0], [0], [1], [0, 0, 1, 1], [], []>} : vector<128x128xbf16>, vector<128x128xbf16>, vector<128x128xf32> -> vector<128x128xf32>
    %12 = vector.broadcast %9 : vector<1x128xf32> to vector<128x128xf32>
    %13 = arith.addf %11, %12 : vector<128x128xf32>
    %cst_11 = arith.constant 0.000000e+00 : f32
    %14 = vector.broadcast %cst_11 : f32 to vector<128x128xf32>
    %15 = arith.maximumf %13, %14 : vector<128x128xf32>
    %c0_12 = arith.constant 0 : index
    %c0_13 = arith.constant 0 : index
    %16 = vector.load %arg6[%c0_12, %c0_13] : memref<128x128xf32, #tpu.memory_space<vmem>>, vector<128x128xf32>
    tpu.vector_store %arg6[%c0_12, %c0_13], %15 {strides = array<i32>} : memref<128x128xf32, #tpu.memory_space<vmem>>, vector<128x128xf32>,
    return
  }
  func.func @transform_0(%arg0: i32) -> (i32, i32) {
    %c0_i32 = arith.constant 0 : i32
    %c0_i32_0 = arith.constant 0 : i32
    return %arg0, %c0_i32 : i32, i32
  }
  func.func @transform_1(%arg0: i32) -> (i32, i32) {
    %c0_i32 = arith.constant 0 : i32
    %c0_i32_0 = arith.constant 0 : i32
    %c0_i32_1 = arith.constant 0 : i32
    return %c0_i32, %c0_i32_0 : i32, i32
  }
  func.func @transform_2(%arg0: i32) -> (i32, i32) {
    %c0_i32 = arith.constant 0 : i32
    %c0_i32_0 = arith.constant 0 : i32
    %c0_i32_1 = arith.constant 0 : i32
    return %c0_i32, %c0_i32_0 : i32, i32
  }
  func.func @transform_3(%arg0: i32) -> (i32, i32) {
    %c0_i32 = arith.constant 0 : i32
    %c0_i32_0 = arith.constant 0 : i32
    %c0_i32_1 = arith.constant 0 : i32
    return %c0_i32, %c0_i32_0 : i32, i32
  }
  func.func @transform_4(%arg0: i32) -> (i32, i32) {
    %c0_i32 = arith.constant 0 : i32
    %c0_i32_0 = arith.constant 0 : i32
    %c0_i32_1 = arith.constant 0 : i32
    return %c0_i32, %c0_i32_0 : i32, i32
  }
  func.func @transform_5(%arg0: i32) -> (i32, i32) {
    %c0_i32 = arith.constant 0 : i32
    %c0_i32_0 = arith.constant 0 : i32
    return %arg0, %c0_i32 : i32, i32
  }
}

</mosaic_0001>

<bundles_post_ra>
// kernel: tpu_custom_call.1
= control target key start
LH: loop header
LB: loop body
LE: loop exit
PB: predicated region body
PF: predicated region fallthrough
CT: control target
= control target key end

     0   :  { %10 = vsyncpa [#allocation3], 0  ;;  %s1540_s0 = inlined_call_operand.hbm [shape: bf16[384,128], index: 0, kind: input, shape index: {}]   ;;  %s1541_s1 = inlined_call_operand.hbm [shape: bf16[128,128], index: 1, kind: input, shape index: {}]   ;;  %s1542_s2 = inlined_call_operand.vmem [shape: f32[1,128], index: 2, kind: input, shape index: {}]   ;;  %s1543_s3 = inlined_call_operand.hbm [shape: bf16[128,128], index: 3, kind: input, shape index: {}]   ;;  %s1544_s4 = inlined_call_operand.vmem [shape: f32[1,128], index: 4, kind: input, shape index: {}]   ;;  %s1545_s5 = inlined_call_operand.hbm [shape: f32[384,128], index: 5, kind: output, shape index: {}]  }
   0x1   :  { %12 = vsyncpa [#allocation3 + $0x1], 0 }
   0x2   :  { %13 = vsyncpa [#allocation6], 0 }
   0x3   :  { %14 = vsyncpa [#allocation4], 0 }
   0x4   :  { %16 = vsyncpa [#allocation4 + $0x1], 0  ;;  %s1270_s18 = smov 0   ;;  %s1272_s19 = smov 0  }
   0x5   :  { %s1274_s20 = smov 0   ;;  %s1276_s21 = smov 0  }
   0x6 LB: > { %s1291_s22 = sadd.s32 4294967295, %s1230_s21   ;;  %s837_s23 = sadd.s32 4294967294, %s1230_s21   ;;  %s1230_s21 = sphi %s1276_s21, %s1564_s21   ;;  %s1226_s20 = sphi %s1274_s20, %s1563_s20   ;;  %s1222_s19 = sphi %s1272_s19, %s1562_s19   ;;  %s1218_s18 = sphi %s1270_s18, %s1561_s18  }
   0x7   : > { %p42_p0 = scmp.ne.s32.totalorder %s1222_s19, %s1218_s18  ;;  %p1546_p1 = scmp.eq.s32.totalorder %s1291_s22, 0 }
   0x8   : > { %p156_p3 = scmp.eq.s32.totalorder %s837_s23, 2  ;;  %p838_p5 = scmp.ge.s32.totalorder %s1230_s21, 1 }
   0x9   : > { %p1300_p4 = por %p1546_p1, %p42_p0  ;;  %p163_p7 = scmp.lt.s32.totalorder %s1230_s21, 4 }
   0xa   : > { %p1305_p6 = por %p156_p3, %p42_p0  ;;  %s1232_s27 = smov [#allocation5]  }
   0xb   : > { %s1549_s24 = scalar_select %p1300_p4, 1, 0 }
   0xc   : > { %s1550_s25 = scalar_select %p1305_p6, 1, 0 }
   0xd   : > { %p1310_p8 = pnand %p838_p5, %p163_p7  ;;  %s175_s28 = sshll.u32 %s1232_s27, 4  ;;  %s176_s28 = int_to_ptr.vmem [resolvable:$true] %s175_s28 }
   0xe   : > { %s1233_s30 = smov [#allocation7]   ;;  %s1074_s9 = scalar_lea.hbm %s1541_s1, 1024 }
   0xf   : > { %s1551_s26 = scalar_select %p1310_p8, 1, 0 }
  0x10   : > { %p991_p9 = pneg %p1310_p8  ;;  %s191_s6 = sshll.u32 %s1233_s30, 4  ;;  %s1322_s6 = int_to_ptr.vmem [resolvable:$true] %s191_s6 }
  0x11   : > { %p1075_p11 = scmp.ne.s32.totalorder %s1541_s1, %s1074_s9  ;;  %p1081_p3 = scmp.lt.u32.totalorder %s1074_s9, %s1541_s1 }
  0x12   : > { %p1318_p10 = pnand %p991_p9, %p1546_p1 }
  0x14   : > { %p1076_p12 = pneg %p1318_p10 }
  0x16   : > { %p1077_p13 = pnand %p1076_p12, %p1075_p11 }
  0x18   : > { %p1078_p0 = pneg %p1077_p13 }
  0x1a   : > { %p1083_p5 = pnand %p1081_p3, %p1078_p0 }
  0x1c   : > { %1086 = shalt.err (!%p1083_p5)
}
  0x1d   : > { %s1087_s14 = scalar_lea.vmem %s176_s28, 1024  ;;  %p1095_p2 = scmp.lt.s32.totalorder %s176_s28, %s176_s28 }
  0x1e   : > { %p1088_p7 = scmp.ne.s32.totalorder %s176_s28, %s1087_s14  ;;  %p1096_p6 = scmp.lt.s32.totalorder %s1087_s14, %s1087_s14 }
  0x20   : > { %p1090_p9 = pnand %p1088_p7, %p1076_p12  ;;  %p1097_p4 = por %p1096_p6, %p1095_p2 }
  0x22   : > { %p1091_p1 = pneg %p1090_p9 }
  0x24   : > { %p1098_p8 = pnand %p1097_p4, %p1091_p1 }
  0x26   : > { %1101 = shalt.err (!%p1098_p8)
}
  0x27   : > { %s1234_s15 = smov 64   ;;  %s1235_s16 = smov 4  }
  0x28   : > { %994 = dma.hbm_to_vmem [thread:$0]  (!%p1318_p10), %s1541_s1, 1024, %s176_s28, [#allocation6], %s1234_s15, %s1234_s15, %s1235_s16  }
  0x29   : > { %s1102_s7 = scalar_lea.hbm %s1543_s3, 1024 }
  0x2a   : > { %p1103_p1 = scmp.ne.s32.totalorder %s1543_s3, %s1102_s7  ;;  %p1109_p6 = scmp.lt.u32.totalorder %s1102_s7, %s1543_s3 }
  0x2c   : > { %p1105_p2 = pnand %p1103_p1, %p1076_p12 }
  0x2e   : > { %p1106_p4 = pneg %p1105_p2 }
  0x30   : > { %p1111_p8 = pnand %p1109_p6, %p1106_p4 }
  0x32   : > { %1114 = shalt.err (!%p1111_p8)
}
  0x33   : > { %s1115_s28 = scalar_lea.vmem %s1322_s6, 1024  ;;  %p1123_p3 = scmp.lt.s32.totalorder %s1322_s6, %s1322_s6 }
  0x34   : > { %p1116_p11 = scmp.ne.s32.totalorder %s1322_s6, %s1115_s28  ;;  %p1124_p5 = scmp.lt.s32.totalorder %s1115_s28, %s1115_s28 }
  0x36   : > { %p1118_p13 = pnand %p1116_p11, %p1076_p12  ;;  %p1125_p7 = por %p1124_p5, %p1123_p3 }
  0x38   : > { %p1119_p0 = pneg %p1118_p13 }
  0x3a   : > { %p1126_p9 = pnand %p1125_p7, %p1119_p0 }
  0x3c   : > { %1129 = shalt.err (!%p1126_p9)
}
  0x3d   : > { %997 = dma.hbm_to_vmem [thread:$0]  (!%p1318_p10), %s1543_s3, 1024, %s1322_s6, [#allocation6], %s1234_s15, %s1234_s15, %s1235_s16  }
  0x3e   : > { %s1378_s29 = sadd.s32 1, %s1230_s21   ;;  %s29_s14 = sadd.s32 1, %s1226_s20 }
  0x3f   : > { %s26_s17 = ssub.s32 %s1230_s21, %s1378_s29  ;;  %p36_p12 = scmp.ne.s32.totalorder %s1226_s20, %s1222_s19 }
  0x40   : > { %p27_p1 = scmp.eq.s32.totalorder %s26_s17, 0  ;;  %p37_p2 = scmp.eq.s32.totalorder %s1230_s21, 0 }
  0x41   : > { %p1553_p4 = scmp.eq.s32.totalorder %s1291_s22, 2  ;;  %p1008_p8 = scmp.lt.s32.totalorder %s1230_s21, 3 }
  0x42   : > { %s1394_s27 = scalar_select %p27_p1, %s1226_s20, %s29_s14  }
  0x43   : > { %p1388_p6 = por %p1553_p4, %p36_p12  ;;  %p38_p11 = por %p37_p2, %p36_p12 }
  0x44   : > { %s208_s30 = sand.u32 1, %s1226_s20   ;;  %s881_s6 = sshll.u32 %s1230_s21, 10 }
  0x45   : > { %s842_s7 = sshll.u32 %s208_s30, 6  ;;  %s1401_s10 = scalar_lea.hbm %s1540_s0, %s881_s6 }
  0x46   : > { %s212_s11 = scalar_lea.vmem [#allocation2], %s842_s7  ;;  %p1405_p10 = pnand %p1008_p8, %p38_p11 }
  0x47   : > { %s219_s28 = sshll.u32 %s212_s11, 4  ;;  %s1409_s13 = scalar_lea.sflag [#allocation3], %s208_s30  ;;  %s1403_s28 = int_to_ptr.vmem [resolvable:$true] %s219_s28 }
  0x48   : > { %s1130_s14 = scalar_lea.hbm %s1401_s10, 1024  ;;  %p1132_p0 = pneg %p1405_p10 }
  0x49   : > { %p1131_p13 = scmp.ne.s32.totalorder %s1401_s10, %s1130_s14  ;;  %s1135_s6 = scalar_lea.hbm %s1540_s0, 3072 }
  0x4a   : > { %p1136_p7 = scmp.lt.u32.totalorder %s1401_s10, %s1540_s0  ;;  %p1137_p9 = scmp.lt.u32.totalorder %s1135_s6, %s1130_s14 }
  0x4b   : > { %p1133_p3 = pnand %p1132_p0, %p1131_p13  ;;  %p1139_p1 = scmp.lt.u32.totalorder %s1130_s14, %s1401_s10 }
  0x4c   : > { %p1138_p12 = por %p1137_p9, %p1136_p7 }
  0x4d   : > { %p1134_p5 = pneg %p1133_p3 }
  0x4e   : > { %p1140_p2 = por %p1139_p1, %p1138_p12 }
  0x50   : > { %p1141_p4 = pnand %p1140_p2, %p1134_p5 }
  0x52   : > { %1144 = shalt.err (!%p1141_p4)
}
  0x53   : > { %s1145_s30 = scalar_lea.vmem %s1403_s28, 1024  ;;  %s1236_s11 = smov [#allocation2]  }
  0x54   : > { %p1146_p8 = scmp.ne.s32.totalorder %s1403_s28, %s1145_s30  ;;  %s1150_s17 = sshll.u32 %s1236_s11, 4  ;;  %s1151_s17 = int_to_ptr.vmem [resolvable:$false] %s1150_s17 }
  0x55   : > { %s1152_s7 = scalar_lea.vmem %s1151_s17, 2048  ;;  %p1153_p3 = scmp.lt.s32.totalorder %s1403_s28, %s1151_s17 }
  0x56   : > { %p1148_p11 = pnand %p1146_p8, %p1132_p0  ;;  %p1154_p7 = scmp.lt.s32.totalorder %s1152_s7, %s1145_s30 }
  0x58   : > { %p1149_p13 = pneg %p1148_p11  ;;  %p1155_p9 = por %p1154_p7, %p1153_p3 }
  0x5a   : > { %p1156_p12 = pnand %p1155_p9, %p1149_p13 }
  0x5c   : > { %1159 = shalt.err (!%p1156_p12)
}
  0x5d   : > { %1001 = dma.hbm_to_vmem [thread:$0]  (!%p1405_p10), %s1401_s10, 1024, %s1403_s28, %s1409_s13, %s1234_s15, %s1234_s15, %s1235_s16  }
  0x5e   : > { %p1556_p0 = scmp.ne.s32.totalorder %s1551_s26, 0 }
  0x5f   : > { %s1443_s14 = sand.u32 (!%p1556_p0), 1, %s1222_s19   ;;  %p1557_p5 = scmp.ne.s32.totalorder (!%p1556_p0), %s1549_s24, 0 }
  0x60   : > { %231 = sbr.rel (%p1556_p0) target bundleno = 620 (0x26c), region = 40  ;;  %s846_s6 = sshll.u32 (!%p1556_p0), %s1443_s14, 6 }
  0x61   : > { %s234_s8 = scalar_lea.sflag (!%p1556_p0), [#allocation3], %s1443_s14  ;;  %s1447_s9 = scalar_lea.vmem (!%p1556_p0), [#allocation2], %s846_s6 }
  0x67   : > { %1205 = dma.done.wait (%p1557_p5), %s234_s8, 1024  }
  0x68   : > { %1207 = vsyncadd (%p1557_p5), %s234_s8, 4294966272  ;;  %p1558_p10 = scmp.eq.s32.totalorder %s1291_s22, 0 }
  0x6a   : > { %1209 = dma.done.wait (%p1558_p10), [#allocation6], 2048   ;;  %p1559_p1 = pmov %p1558_p10 }
  0x6b   : > { %v1050_v0 = vld [vmem:[#allocation5] sm:$0xff]   ;;  %v1051_v1 = vld [vmem:[#allocation5 + $0x8] sm:$0xff]   ;;  %v1052_v2 = vld [vmem:[#allocation5 + $0x10] sm:$0xff]   ;;  %s849_s10 = sshll.u32 %s1443_s14, 7  ;;  %s882_s12 = sshll.u32 %s1291_s22, 11 }
  0x6c   : > { %1211 = vsyncadd (%p1559_p1), [#allocation6], 4294965248  ;;  %915 = vmatprep.subr.bf16.mxu0 %v1050_v0  ;;  %v1053_v3 = vld [vmem:[#allocation5 + $0x18] sm:$0xff]   ;;  %v1058_v4 = vld [vmem:[%s1447_s9] sm:$0xff]   ;;  %s1472_s28 = scalar_lea.vmem [#allocation8], %s849_s10  ;;  %s1492_s17 = scalar_lea.hbm %s1545_s5, %s882_s12 }
  0x6d   : > { %916 = vmatpush3.bf16.msra.mxu0 %v1050_v0  ;;  %931 = vmatprep.mubr.bf16.mxu0 %v1058_v4  ;;  %v1054_v5 = vld [vmem:[#allocation5 + $0x20] sm:$0xff]   ;;  %v1055_v6 = vld [vmem:[#allocation5 + $0x28] sm:$0xff]   ;;  %v1056_v9 = vld [vmem:[#allocation5 + $0x30] sm:$0xff]   ;;  %s745_s13 = sshll.u32 %s1472_s28, 4  ;;  %s732_s22 = scalar_lea.sflag [#allocation4], %s1443_s14  ;;  %s1494_s13 = int_to_ptr.vmem [resolvable:$true] %s745_s13 }
  0x6e   : > { %917 = vmatprep.subr.bf16.mxu0 %v1051_v1  ;;  %v1066_v7 = vld [vmem:[#allocation7] sm:$0xff]   ;;  %v1067_v8 = vld [vmem:[#allocation7 + $0x8] sm:$0xff]   ;;  %v1068_v10 = vld [vmem:[#allocation7 + $0x10] sm:$0xff]   ;;  %s1160_s7 = scalar_lea.vmem %s1494_s13, 2048  ;;  %s1237_s6 = smov [#allocation8]  }
  0x6f   : > { %947 = vmatprep.subr.bf16.mxu1 %v1066_v7  ;;  %v1057_v11 = vld [vmem:[#allocation5 + $0x38] sm:$0xff]   ;;  %v1070_v13 = vld [vmem:[#allocation7 + $0x20] sm:$0xff]   ;;  %v1059_v14 = vld [vmem:[%s1447_s9 + $0x8] sm:$0xff]   ;;  %p1161_p2 = scmp.ne.s32.totalorder %s1494_s13, %s1160_s7  ;;  %s1164_s8 = sshll.u32 %s1237_s6, 4  ;;  %s1165_s8 = int_to_ptr.vmem [resolvable:$false] %s1164_s8 }
  0x70   : > { %948 = vmatpush3.bf16.msra.mxu1 %v1066_v7  ;;  %v1069_v12 = vld [vmem:[#allocation7 + $0x18] sm:$0xff]   ;;  %v1060_v15 = vld [vmem:[%s1447_s9 + $0x10] sm:$0xff]   ;;  %v1071_v16 = vld [vmem:[#allocation7 + $0x28] sm:$0xff]   ;;  %p1167_p11 = scmp.lt.s32.totalorder %s1494_s13, %s1165_s8 }
  0x71   : > { %918 = vmatpush3.bf16.msra.mxu0 %v1051_v1  ;;  %949 = vmatprep.subr.bf16.mxu1 %v1067_v8  ;;  %v1061_v17 = vld [vmem:[%s1447_s9 + $0x18] sm:$0xff]   ;;  %v1062_v18 = vld [vmem:[%s1447_s9 + $0x20] sm:$0xff]   ;;  %v1063_v19 = vld [vmem:[%s1447_s9 + $0x28] sm:$0xff]   ;;  %p1162_p4 = pnand %p1161_p2, %p1388_p6 }
  0x72   : > { %919 = vmatprep.subr.bf16.mxu0 %v1052_v2  ;;  %v1064_v20 = vld [vmem:[%s1447_s9 + $0x30] sm:$0xff]   ;;  %v1065_v21 = vld [vmem:[%s1447_s9 + $0x38] sm:$0xff]   ;;  %v850_v24 = vld [vmem:[%s1542_s2] ss:$0 sm:$0xff]  ;;  %s1166_s9 = scalar_lea.vmem %s1165_s8, 4096 }
  0x73   : > { %v1072_v22 = vld [vmem:[#allocation7 + $0x30] sm:$0xff]   ;;  %v1073_v23 = vld [vmem:[#allocation7 + $0x38] sm:$0xff]   ;;  %p1163_p8 = pneg %p1162_p4  ;;  %p1168_p13 = scmp.lt.s32.totalorder %s1166_s9, %s1160_s7 }
  0x74   : > { %950 = vmatpush3.bf16.msra.mxu1 %v1067_v8 }
  0x75   : > { %920 = vmatpush3.bf16.msra.mxu0 %v1052_v2  ;;  %951 = vmatprep.subr.bf16.mxu1 %v1068_v10  ;;  %p1169_p3 = por %p1168_p13, %p1167_p11 }
  0x76   : > { %921 = vmatprep.subr.bf16.mxu0 %v1053_v3 }
  0x77   : > { %p1170_p7 = pnand %p1169_p3, %p1163_p8 }
  0x78   : > { %952 = vmatpush3.bf16.msra.mxu1 %v1068_v10 }
  0x79   : > { %922 = vmatpush3.bf16.msra.mxu0 %v1053_v3  ;;  %953 = vmatprep.subr.bf16.mxu1 %v1069_v12 }
  0x7a   : > { %923 = vmatprep.subr.bf16.mxu0 %v1054_v5 }
  0x7c   : > { %954 = vmatpush3.bf16.msra.mxu1 %v1069_v12 }
  0x7d   : > { %924 = vmatpush3.bf16.msra.mxu0 %v1054_v5  ;;  %955 = vmatprep.subr.bf16.mxu1 %v1070_v13 }
  0x7e   : > { %925 = vmatprep.subr.bf16.mxu0 %v1055_v6 }
  0x80   : > { %956 = vmatpush3.bf16.msra.mxu1 %v1070_v13 }
  0x81   : > { %926 = vmatpush3.bf16.msra.mxu0 %v1055_v6  ;;  %957 = vmatprep.subr.bf16.mxu1 %v1071_v16 }
  0x82   : > { %927 = vmatprep.subr.bf16.mxu0 %v1056_v9 }
  0x84   : > { %958 = vmatpush3.bf16.msra.mxu1 %v1071_v16 }
  0x85   : > { %928 = vmatpush3.bf16.msra.mxu0 %v1056_v9  ;;  %959 = vmatprep.subr.bf16.mxu1 %v1072_v22 }
  0x86   : > { %929 = vmatprep.subr.bf16.mxu0 %v1057_v11 }
  0x88   : > { %960 = vmatpush3.bf16.msra.mxu1 %v1072_v22 }
  0x89   : > { %930 = vmatpush3.bf16.msra.mxu0 %v1057_v11  ;;  %961 = vmatprep.subr.bf16.mxu1 %v1073_v23 }
  0x8c   : > { %932 = vmatmul.mubr.bf16.vlgmr.msra.gmra.mrb[0].mxu0 %v1059_v14  ;;  %962 = vmatpush3.bf16.msra.mxu1 %v1073_v23 }
  0x8d   : > { %935 = vmatprep.mubr.bf16.mxu0 %v1060_v15 }
  0x94   : > { %936 = vmatmul.mubr.bf16.gmra.mrb[4].mxu0 %v1061_v17  ;;  %v867_v17 = vld [vmem:[%s1544_s4] ss:$0 sm:$0xff] }
  0x95   : > { %939 = vmatprep.mubr.bf16.mxu0 %v1062_v18 }
  0x9c   : > { %940 = vmatmul.mubr.bf16.gmra.mrb[8].mxu0 %v1063_v19 }
  0x9d   : > { %943 = vmatprep.mubr.bf16.mxu0 %v1064_v20 }
  0xa4   : > { %944 = vmatmul.mubr.bf16.gmra.mrb[12].mxu0 %v1065_v21 }
 0x15f   : > { %v933_v25 = vpop.f32.mrb[0].mxu0 }
 0x160   : > { %v453_v26 = vadd.f32 %v933_v25, %v850_v24  ;;  %v444_v27 = vpop.f32.mrb[1].mxu0 }
 0x161   : > { %v445_v28 = vadd.f32 %v850_v24, %v444_v27  ;;  %v934_v29 = vpop.f32.mrb[2].mxu0 }
 0x162   : > { %v456_v30 = vadd.f32 %v934_v29, %v850_v24  ;;  %v447_v31 = vpop.f32.mrb[3].mxu0  ;;  %v509_v33 = vmax.f32 %v453_v26, 0.0 }
 0x163   : > { %v448_v32 = vadd.f32 %v850_v24, %v447_v31  ;;  %v507_v35 = vmax.f32 %v445_v28, 0.0 }
 0x164   : > { %v510_v34 = vmax.f32 %v456_v30, 0.0 }
 0x165   : > { %v508_v36 = vmax.f32 %v448_v32, 0.0 }
 0x166   : > { %v541_v37 = vpack.c.bf16 %v510_v34, %v509_v33 }
 0x167   : > { %v937_v38 = vpop.f32.mrb[4].mxu0  ;;  %v540_v39 = vpack.c.bf16 %v508_v36, %v507_v35 }
 0x168   : > { %v469_v40 = vadd.f32 %v937_v38, %v850_v24  ;;  %v460_v41 = vpop.f32.mrb[5].mxu0 }
 0x169   : > { %v461_v42 = vadd.f32 %v850_v24, %v460_v41  ;;  %v938_v43 = vpop.f32.mrb[6].mxu0  ;;  %963 = vmatprep.mubr.bf16.mxu1 %v540_v39 }
 0x16a   : > { %v472_v44 = vadd.f32 %v938_v43, %v850_v24  ;;  %v463_v45 = vpop.f32.mrb[7].mxu0  ;;  %964 = vmatmul.mubr.bf16.vlgmr.msra.gmra.mrb[0].mxu1 %v541_v37  ;;  %v513_v47 = vmax.f32 %v469_v40, 0.0 }
 0x16b   : > { %v464_v46 = vadd.f32 %v850_v24, %v463_v45  ;;  %v511_v49 = vmax.f32 %v461_v42, 0.0 }
 0x16c   : > { %v514_v48 = vmax.f32 %v472_v44, 0.0 }
 0x16d   : > { %v512_v50 = vmax.f32 %v464_v46, 0.0 }
 0x16e   : > { %v543_v51 = vpack.c.bf16 %v514_v48, %v513_v47 }
 0x16f   : > { %v542_v52 = vpack.c.bf16 %v512_v50, %v511_v49  ;;  %v941_v53 = vpop.f32.mrb[8].mxu0 }
 0x170   : > { %v485_v54 = vadd.f32 %v941_v53, %v850_v24  ;;  %v476_v55 = vpop.f32.mrb[9].mxu0 }
 0x171   : > { %v477_v56 = vadd.f32 %v850_v24, %v476_v55  ;;  %v942_v57 = vpop.f32.mrb[10].mxu0  ;;  %967 = vmatprep.mubr.bf16.mxu1 %v542_v52 }
 0x172   : > { %v488_v58 = vadd.f32 %v942_v57, %v850_v24  ;;  %v479_v59 = vpop.f32.mrb[11].mxu0  ;;  %968 = vmatmul.mubr.bf16.gmra.mrb[4].mxu1 %v543_v51  ;;  %v517_v61 = vmax.f32 %v485_v54, 0.0 }
 0x173   : > { %v480_v60 = vadd.f32 %v850_v24, %v479_v59  ;;  %v515_v63 = vmax.f32 %v477_v56, 0.0 }
 0x174   : > { %v518_v62 = vmax.f32 %v488_v58, 0.0 }
 0x175   : > { %v516_v0 = vmax.f32 %v480_v60, 0.0 }
 0x176   : > { %v545_v1 = vpack.c.bf16 %v518_v62, %v517_v61 }
 0x177   : > { %v544_v2 = vpack.c.bf16 %v516_v0, %v515_v63  ;;  %v945_v3 = vpop.f32.mrb[12].mxu0 }
 0x178   : > { %v501_v4 = vadd.f32 %v945_v3, %v850_v24  ;;  %v492_v5 = vpop.f32.mrb[13].mxu0 }
 0x179   : > { %v493_v6 = vadd.f32 %v850_v24, %v492_v5  ;;  %v946_v7 = vpop.f32.mrb[14].mxu0  ;;  %971 = vmatprep.mubr.bf16.mxu1 %v544_v2 }
 0x17a   : > { %v504_v8 = vadd.f32 %v946_v7, %v850_v24  ;;  %v495_v9 = vpop.f32.mrb[15].mxu0  ;;  %972 = vmatmul.mubr.bf16.gmra.mrb[8].mxu1 %v545_v1  ;;  %v521_v11 = vmax.f32 %v501_v4, 0.0 }
 0x17b   : > { %v496_v10 = vadd.f32 %v850_v24, %v495_v9  ;;  %v519_v13 = vmax.f32 %v493_v6, 0.0 }
 0x17c   : > { %v522_v12 = vmax.f32 %v504_v8, 0.0 }
 0x17d   : > { %v520_v14 = vmax.f32 %v496_v10, 0.0 }
 0x17e   : > { %v547_v15 = vpack.c.bf16 %v522_v12, %v521_v11 }
 0x17f   : > { %v546_v16 = vpack.c.bf16 %v520_v14, %v519_v13 }
 0x181   : > { %975 = vmatprep.mubr.bf16.mxu1 %v546_v16 }
 0x182   : > { %976 = vmatmul.mubr.bf16.gmra.mrb[12].mxu1 %v547_v15 }
 0x23d   : > { %v965_v18 = vpop.f32.mrb[0].mxu1 }
 0x23e   : > { %v645_v19 = vadd.f32 %v965_v18, %v867_v17  ;;  %v636_v20 = vpop.f32.mrb[1].mxu1 }
 0x23f   : > { %v637_v21 = vadd.f32 %v867_v17, %v636_v20  ;;  %v966_v22 = vpop.f32.mrb[2].mxu1 }
 0x240   : > { %v701_v23 = vmax.f32 %v645_v19, 0.0  ;;  %v648_v24 = vadd.f32 %v966_v22, %v867_v17  ;;  %v639_v25 = vpop.f32.mrb[3].mxu1 }
 0x241   : > { %v699_v26 = vmax.f32 %v637_v21, 0.0  ;;  %v640_v27 = vadd.f32 %v867_v17, %v639_v25 }
 0x242   : > { %717 = vst [vmem:[%s1472_s28 + $0x10] sm:$0xff] %v701_v23  ;;  %v702_v28 = vmax.f32 %v648_v24, 0.0 }
 0x243   : > { %715 = vst [vmem:[%s1472_s28] sm:$0xff] %v699_v26  ;;  %v700_v29 = vmax.f32 %v640_v27, 0.0 }
 0x244   : > { %718 = vst [vmem:[%s1472_s28 + $0x18] sm:$0xff] %v702_v28 }
 0x245   : > { %716 = vst [vmem:[%s1472_s28 + $0x8] sm:$0xff] %v700_v29  ;;  %v969_v30 = vpop.f32.mrb[4].mxu1 }
 0x246   : > { %v661_v31 = vadd.f32 %v969_v30, %v867_v17  ;;  %v652_v32 = vpop.f32.mrb[5].mxu1 }
 0x247   : > { %v653_v33 = vadd.f32 %v867_v17, %v652_v32  ;;  %v970_v34 = vpop.f32.mrb[6].mxu1 }
 0x248   : > { %v705_v35 = vmax.f32 %v661_v31, 0.0  ;;  %v664_v36 = vadd.f32 %v970_v34, %v867_v17  ;;  %v655_v37 = vpop.f32.mrb[7].mxu1 }
 0x249   : > { %v703_v38 = vmax.f32 %v653_v33, 0.0  ;;  %v656_v39 = vadd.f32 %v867_v17, %v655_v37 }
 0x24a   : > { %721 = vst [vmem:[%s1472_s28 + $0x30] sm:$0xff] %v705_v35  ;;  %v706_v40 = vmax.f32 %v664_v36, 0.0 }
 0x24b   : > { %719 = vst [vmem:[%s1472_s28 + $0x20] sm:$0xff] %v703_v38  ;;  %v704_v41 = vmax.f32 %v656_v39, 0.0 }
 0x24c   : > { %722 = vst [vmem:[%s1472_s28 + $0x38] sm:$0xff] %v706_v40 }
 0x24d   : > { %720 = vst [vmem:[%s1472_s28 + $0x28] sm:$0xff] %v704_v41  ;;  %v973_v42 = vpop.f32.mrb[8].mxu1 }
 0x24e   : > { %v677_v43 = vadd.f32 %v973_v42, %v867_v17  ;;  %v668_v44 = vpop.f32.mrb[9].mxu1 }
 0x24f   : > { %v669_v45 = vadd.f32 %v867_v17, %v668_v44  ;;  %v974_v46 = vpop.f32.mrb[10].mxu1 }
 0x250   : > { %v709_v47 = vmax.f32 %v677_v43, 0.0  ;;  %v680_v48 = vadd.f32 %v974_v46, %v867_v17  ;;  %v671_v49 = vpop.f32.mrb[11].mxu1 }
 0x251   : > { %v707_v50 = vmax.f32 %v669_v45, 0.0  ;;  %v672_v51 = vadd.f32 %v867_v17, %v671_v49 }
 0x252   : > { %725 = vst [vmem:[%s1472_s28 + $0x50] sm:$0xff] %v709_v47  ;;  %v710_v52 = vmax.f32 %v680_v48, 0.0 }
 0x253   : > { %723 = vst [vmem:[%s1472_s28 + $0x40] sm:$0xff] %v707_v50  ;;  %v708_v53 = vmax.f32 %v672_v51, 0.0 }
 0x254   : > { %726 = vst [vmem:[%s1472_s28 + $0x58] sm:$0xff] %v710_v52 }
 0x255   : > { %724 = vst [vmem:[%s1472_s28 + $0x48] sm:$0xff] %v708_v53  ;;  %v977_v54 = vpop.f32.mrb[12].mxu1 }
 0x256   : > { %v693_v55 = vadd.f32 %v977_v54, %v867_v17  ;;  %v684_v56 = vpop.f32.mrb[13].mxu1 }
 0x257   : > { %v685_v57 = vadd.f32 %v867_v17, %v684_v56  ;;  %v978_v58 = vpop.f32.mrb[14].mxu1 }
 0x258   : > { %v713_v59 = vmax.f32 %v693_v55, 0.0  ;;  %v696_v60 = vadd.f32 %v978_v58, %v867_v17  ;;  %v687_v61 = vpop.f32.mrb[15].mxu1 }
 0x259   : > { %v711_v62 = vmax.f32 %v685_v57, 0.0  ;;  %v688_v63 = vadd.f32 %v867_v17, %v687_v61 }
 0x25a   : > { %729 = vst [vmem:[%s1472_s28 + $0x70] sm:$0xff] %v713_v59  ;;  %v714_v0 = vmax.f32 %v696_v60, 0.0 }
 0x25b   : > { %727 = vst [vmem:[%s1472_s28 + $0x60] sm:$0xff] %v711_v62  ;;  %v712_v1 = vmax.f32 %v688_v63, 0.0 }
 0x25c   : > { %730 = vst [vmem:[%s1472_s28 + $0x78] sm:$0xff] %v714_v0 }
 0x25d   : > { %728 = vst [vmem:[%s1472_s28 + $0x68] sm:$0xff] %v712_v1 }
 0x25e   : > { %1173 = shalt.err (!%p1170_p7)
}
 0x25f   : > { %s1174_s24 = scalar_lea.hbm %s1492_s17, 2048  ;;  %s1178_s16 = scalar_lea.hbm %s1545_s5, 6144 }
 0x260   : > { %p1175_p9 = scmp.ne.s32.totalorder %s1492_s17, %s1174_s24  ;;  %p1179_p5 = scmp.lt.u32.totalorder %s1492_s17, %s1545_s5 }
 0x261   : > { %p1180_p10 = scmp.lt.u32.totalorder %s1178_s16, %s1174_s24  ;;  %p1182_p2 = scmp.lt.u32.totalorder %s1174_s24, %s1492_s17 }
 0x262   : > { %p1176_p12 = pnand %p1175_p9, %p1388_p6 }
 0x263   : > { %p1181_p1 = por %p1180_p10, %p1179_p5 }
 0x264   : > { %p1177_p0 = pneg %p1176_p12 }
 0x265   : > { %p1183_p4 = por %p1182_p2, %p1181_p1 }
 0x267   : > { %p1184_p8 = pnand %p1183_p4, %p1177_p0 }
 0x269   : > { %1187 = shalt.err (!%p1184_p8)
}
 0x26a   : > { %s1238_s12 = smov 128   ;;  %s1239_s30 = smov 8  }
 0x26b   : > { %989 = dma.vmem_to_hbm [thread:$0]  (%p1388_p6), %s1494_s13, 2048, %s1492_s17, %s732_s22, %s1238_s12, %s1238_s12, %s1239_s30  }
 0x26c PF: > { %p1011_p11 = scmp.ge.s32.totalorder %s1230_s21, 2  ;;  %s760_s11 = sand.u32 1, %s1218_s18  }
 0x26d   : > { %p1560_p13 = scmp.ne.s32.totalorder %s1550_s25, 0  ;;  %s761_s7 = scalar_lea.sflag [#allocation4], %s760_s11 }
 0x26f   : > { %p1003_p3 = pnand %p1011_p11, %p1560_p13 }
 0x271   : > { %1213 = dma.done.wait (!%p1003_p3), %s761_s7, 2048  }
 0x272   : > { %1215 = vsyncadd (!%p1003_p3), %s761_s7, 4294965248  ;;  %p19_p7 = scmp.ge.s32.totalorder %s1378_s29, 5   ;;  %s1561_s18 = smov %s1222_s19 }
 0x273   : > { %s1562_s19 = smov %s1226_s20  ;;  %s1563_s20 = smov %s1394_s27 }
 0x274   : > { %s1564_s21 = smov %s1378_s29  ;;  %21 = sbr.rel (!%p19_p7) target bundleno = 6 (0x6), region = 93 }
 0x27b   :  { %766 = vsyncpa [#allocation3], 1 }
 0x27c   :  { %768 = vsyncpa [#allocation3 + $0x1], 1 }
 0x27d   :  { %769 = vsyncpa [#allocation6], 1 }
 0x27e   :  { %770 = vsyncpa [#allocation4], 1 }
 0x27f   :  { %772 = vsyncpa [#allocation4 + $0x1], 1 }

</bundles_post_ra>
